<compile_context>
chip_gen: v6e
topology: v6e:2x2x1
jax: 0.10.0
libtpu: 0.0.40
codegen_flags: <defaults>
</compile_context>

<pallas_src>
import functools

import jax
import jax.numpy as jnp
from jax.experimental import pallas as pl
from jax.experimental.pallas import tpu as pltpu


# ------------------------- small glue helpers (plain python) ----------------
def _pair(v):
    if isinstance(v, (tuple, list)):
        assert len(v) == 2
        return tuple(v)
    return (v, v)


def _quadruple(v):
    if isinstance(v, (tuple, list)):
        assert len(v) == 4
        return tuple(v)
    return (v, v, v, v)


def _round_up(x, m):
    return -(-x // m) * m


# --------------------------- min/max networks (VPU) --------------------------
def _min3(a, b, c):
    return jnp.minimum(jnp.minimum(a, b), c)


def _max3(a, b, c):
    return jnp.maximum(jnp.maximum(a, b), c)


def _med3(a, b, c):
    # median of three = max(min(a,b), min(max(a,b), c))     (4 ops)
    return jnp.maximum(jnp.minimum(a, b), jnp.minimum(jnp.maximum(a, b), c))


def _sort3(a, b, c):
    # full 3-sort, 6 min/max ops
    lo_ab = jnp.minimum(a, b)
    hi_ab = jnp.maximum(a, b)
    lo = jnp.minimum(lo_ab, c)
    mid = jnp.maximum(lo_ab, jnp.minimum(hi_ab, c))
    hi = jnp.maximum(hi_ab, c)
    return lo, mid, hi


def _median9(p):
    """Median of 9 arrays via the classic 19-CE exchange network (fallback)."""
    def cs(a, b):
        return jnp.minimum(a, b), jnp.maximum(a, b)

    p = list(p)
    p[1], p[2] = cs(p[1], p[2]); p[4], p[5] = cs(p[4], p[5]); p[7], p[8] = cs(p[7], p[8])
    p[0], p[1] = cs(p[0], p[1]); p[3], p[4] = cs(p[3], p[4]); p[6], p[7] = cs(p[6], p[7])
    p[1], p[2] = cs(p[1], p[2]); p[4], p[5] = cs(p[4], p[5]); p[7], p[8] = cs(p[7], p[8])
    p[0], p[3] = cs(p[0], p[3]); p[5], p[8] = cs(p[5], p[8]); p[4], p[7] = cs(p[4], p[7])
    p[3], p[6] = cs(p[3], p[6]); p[1], p[4] = cs(p[1], p[4]); p[2], p[5] = cs(p[2], p[5])
    p4 = jnp.minimum(p[4], p[7])
    p4, p2 = cs(p4, p[2])
    p4 = jnp.maximum(p[6], p4)
    return jnp.minimum(p4, p2)


def _median_select(vals):
    """Fallback for kernel sizes != 3x3: partial selection network that places
    the LOWER median (torch.median semantics) at index m."""
    vals = list(vals)
    n = len(vals)
    m = (n - 1) // 2
    for i in range(m + 1):
        for j in range(n - 1, i, -1):
            lo = jnp.minimum(vals[j - 1], vals[j])
            hi = jnp.maximum(vals[j - 1], vals[j])
            vals[j - 1] = lo
            vals[j] = hi
    return vals[m]


# ---------------- fast kernel: 3x3 window, packed-lane layout ----------------
def _median3x3_kernel(x_ref, o_ref):
    # x_ref / o_ref: (bg, Hp_pad, L) with Hp_pad % 8 == 0 and L % 128 == 0.
    # Computes, for every (row, lane), the median of the 3x3 neighbourhood
    # centred there (wrapped borders produce garbage only in rows/columns the
    # wrapper discards).  Roll-direction agnostic: +1 and n-1 rolls are only
    # combined through symmetric min/max/median functions.
    bg, hp, lanes = x_ref.shape

    def one_plane(g, carry):
        x = x_ref[g]                                       # (hp, lanes)
        # vertical neighbours (sublane rolls, XLU)
        xa = pltpu.roll(x, 1, axis=0)
        xb = pltpu.roll(x, hp - 1, axis=0)
        lo, mi, hi = _sort3(xa, x, xb)                     # sorted vertical triples
        # horizontal neighbours (lane rolls, XLU)
        lo_a = pltpu.roll(lo, 1, axis=1)
        lo_b = pltpu.roll(lo, lanes - 1, axis=1)
        mi_a = pltpu.roll(mi, 1, axis=1)
        mi_b = pltpu.roll(mi, lanes - 1, axis=1)
        hi_a = pltpu.roll(hi, 1, axis=1)
        hi_b = pltpu.roll(hi, lanes - 1, axis=1)
        # separable median-of-9: med(max of col-mins, med of col-meds, min of col-maxes)
        a = _max3(lo_a, lo, lo_b)
        b = _med3(mi_a, mi, mi_b)
        c = _min3(hi_a, hi, hi_b)
        o_ref[g] = _med3(a, b, c)
        return carry

    jax.lax.fori_loop(0, bg, one_plane, 0, unroll=(bg <= 8))


def _median3x3_packed(xf, N, C, NC, Hp, Wp, Hp_pad, Wl, G, L, sh, sw,
                      h_out, w_out, plane_bytes, dtype):
    NCg = -(-NC // G)                       # plane groups (G planes per group)

    target_block_bytes = 4 << 20            # ~4 MiB of input per grid step
    bg = max(1, min(NCg, target_block_bytes // max(plane_bytes, 1)))
    if NCg >= 4:
        bg = min(bg, max(1, NCg // 4))      # keep >=4 parallel steps (v7x, 2 TCs)
    NCg_pad = _round_up(NCg, bg)
    total_planes = NCg_pad * G

    # spatial + plane-count zero padding (pad values never reach a valid centre)
    xf = jnp.pad(xf, ((0, total_planes - NC), (0, Hp_pad - Hp), (0, Wl - Wp)))
    # pack G planes side-by-side on the lane axis: (NCg_pad, Hp_pad, G*Wl)
    xpk = xf.reshape(NCg_pad, G, Hp_pad, Wl).transpose(0, 2, 1, 3)
    xpk = xpk.reshape(NCg_pad, Hp_pad, L)

    est_vmem = 4 * bg * plane_bytes + 10 * plane_bytes   # blocks x2 buf + temps
    if est_vmem > 12 * 1024 * 1024:
        cp = pltpu.CompilerParams(
            dimension_semantics=("parallel",),
            vmem_limit_bytes=min(64 * 1024 * 1024, int(est_vmem * 2)))
    else:
        cp = pltpu.CompilerParams(dimension_semantics=("parallel",))

    out = pl.pallas_call(
        _median3x3_kernel,
        out_shape=jax.ShapeDtypeStruct((NCg_pad, Hp_pad, L), dtype),
        grid=(NCg_pad // bg,),
        in_specs=[pl.BlockSpec((bg, Hp_pad, L), lambda i: (i, 0, 0))],
        out_specs=pl.BlockSpec((bg, Hp_pad, L), lambda i: (i, 0, 0)),
        compiler_params=cp,
    )(xpk)

    # unpack lanes -> planes, drop padding, keep only valid window centres
    out = out.reshape(NCg_pad, Hp_pad, G, Wl).transpose(0, 2, 1, 3)
    out = out.reshape(total_planes, Hp_pad, Wl)[:NC]
    rh, rw = 1, 1                           # centre offset of a 3x3 window
    out = out[:, rh: rh + (h_out - 1) * sh + 1: sh,
                 rw: rw + (w_out - 1) * sw + 1: sw]
    return out.reshape(N, C, h_out, w_out)


# ---------------- general fallback kernel (kernel sizes != 3x3) --------------
def _median_pool_general_kernel(x_ref, o_ref, *, kh, kw, sh, sw, h_out, w_out,
                                bnc, row_strip):
    n_strips = -(-h_out // row_strip)
    for p in range(bnc):
        for s in range(n_strips):
            r0 = s * row_strip
            rows = min(row_strip, h_out - r0)
            in_r0 = r0 * sh
            in_rows = (rows - 1) * sh + kh
            xp = x_ref[p, in_r0:in_r0 + in_rows, :]
            vals = []
            for di in range(kh):
                for dj in range(kw):
                    vals.append(xp[di: di + sh * (rows - 1) + 1: sh,
                                   dj: dj + sw * (w_out - 1) + 1: sw])
            med = _median9(vals) if kh * kw == 9 else _median_select(vals)
            o_ref[p, r0:r0 + rows, :] = med


def _median_pool_general(xf, N, C, NC, Hp, Wp, kh, kw, sh, sw, h_out, w_out, dtype):
    itemsize = jnp.dtype(dtype).itemsize
    bytes_per_plane = Hp * Wp * itemsize
    target_block_bytes = 2 << 20
    bnc = max(1, min(NC, target_block_bytes // max(bytes_per_plane, 1)))
    if NC >= 2:
        bnc = min(bnc, -(-NC // 2))
    row_strip = 8
    n_strips = -(-h_out // row_strip)
    bnc = max(1, min(bnc, max(1, 64 // n_strips)))   # bound static unrolling
    nc_pad = -(-NC // bnc) * bnc
    if nc_pad != NC:
        xf = jnp.pad(xf, ((0, nc_pad - NC), (0, 0), (0, 0)))

    kernel = functools.partial(
        _median_pool_general_kernel, kh=kh, kw=kw, sh=sh, sw=sw,
        h_out=h_out, w_out=w_out, bnc=bnc, row_strip=row_strip)

    out = pl.pallas_call(
        kernel,
        out_shape=jax.ShapeDtypeStruct((nc_pad, h_out, w_out), dtype),
        grid=(nc_pad // bnc,),
        in_specs=[pl.BlockSpec((bnc, Hp, Wp), lambda i: (i, 0, 0))],
        out_specs=pl.BlockSpec((bnc, h_out, w_out), lambda i: (i, 0, 0)),
        compiler_params=pltpu.CompilerParams(dimension_semantics=("parallel",)),
    )(xf)
    return out[:NC].reshape(N, C, h_out, w_out)


# ------------------------------- wrapper --------------------------------------
def median_pool2d(x, kernel_size=3, stride=1, padding=0, same=False):
    """JAX/Pallas equivalent of MedianPool2d.forward. x: (N, C, H, W)."""
    kh, kw = _pair(kernel_size)
    sh, sw = _pair(stride)
    N, C, H, W = x.shape

    if same:
        ph = max(kh - sh, 0) if H % sh == 0 else max(kh - H % sh, 0)
        pw = max(kw - sw, 0) if W % sw == 0 else max(kw - W % sw, 0)
        pad_l = pw // 2
        pad_r = pw - pad_l
        pad_t = ph // 2
        pad_b = ph - pad_t
    else:
        pad_l, pad_r, pad_t, pad_b = _quadruple(padding)

    if pad_l or pad_r or pad_t or pad_b:
        assert max(pad_t, pad_b) < H and max(pad_l, pad_r) < W, \
            "reflect padding must be smaller than the spatial dims (torch semantics)"
        x = jnp.pad(x, ((0, 0), (0, 0), (pad_t, pad_b), (pad_l, pad_r)),
                    mode="reflect")

    Hp = H + pad_t + pad_b
    Wp = W + pad_l + pad_r
    h_out = (Hp - kh) // sh + 1
    w_out = (Wp - kw) // sw + 1
    assert h_out >= 1 and w_out >= 1

    NC = N * C
    xf = x.reshape(NC, Hp, Wp)

    # ---- packed-lane layout parameters (fast 3x3 path) ----------------------
    itemsize = x.dtype.itemsize
    if Wp >= 128:
        Wl = _round_up(Wp, 128)
        G = 1
    else:
        Wl = next(d for d in (8, 16, 32, 64, 128) if d >= Wp)
        G = 128 // Wl
    Hp_pad = _round_up(Hp, 8)
    L = G * Wl
    plane_bytes = Hp_pad * L * itemsize

    if kh == 3 and kw == 3 and plane_bytes <= (1 << 20):
        return _median3x3_packed(xf, N, C, NC, Hp, Wp, Hp_pad, Wl, G, L,
                                 sh, sw, h_out, w_out, plane_bytes, x.dtype)
    return _median_pool_general(xf, N, C, NC, Hp, Wp, kh, kw, sh, sw,
                                h_out, w_out, x.dtype)


# ------------------------------ reference ------------------------------------
def _median_pool2d_ref(x, kernel_size=3, stride=1, padding=0, same=False):
    kh, kw = _pair(kernel_size)
    sh, sw = _pair(stride)
    N, C, H, W = x.shape
    if same:
        ph = max(kh - sh, 0) if H % sh == 0 else max(kh - H % sh, 0)
        pw = max(kw - sw, 0) if W % sw == 0 else max(kw - W % sw, 0)
        pad_l, pad_t = pw // 2, ph // 2
        pad_r, pad_b = pw - pad_l, ph - pad_t
    else:
        pad_l, pad_r, pad_t, pad_b = _quadruple(padding)
    if pad_l or pad_r or pad_t or pad_b:
        x = jnp.pad(x, ((0, 0), (0, 0), (pad_t, pad_b), (pad_l, pad_r)),
                    mode="reflect")
    Hp, Wp = x.shape[2], x.shape[3]
    h_out = (Hp - kh) // sh + 1
    w_out = (Wp - kw) // sw + 1
    windows = []
    for di in range(kh):
        for dj in range(kw):
            windows.append(
                x[:, :, di:di + sh * (h_out - 1) + 1:sh,
                        dj:dj + sw * (w_out - 1) + 1:sw])
    stacked = jnp.stack(windows, axis=-1)
    srt = jnp.sort(stacked, axis=-1)
    return srt[..., (kh * kw - 1) // 2]      # torch lower median


# -------------------------------- main ----------------------------------------
if __name__ == "__main__":
    key = jax.random.PRNGKey(0)
    x = jax.random.normal(key, (2, 4, 16, 16), dtype=jnp.float32)

    # Default module config: kernel_size=3, stride=1, padding=0, same=False
    out = median_pool2d(x, kernel_size=3, stride=1, padding=0, same=False)
    out = jax.block_until_ready(out)

    ref = _median_pool2d_ref(x, kernel_size=3, stride=1, padding=0, same=False)
    assert out.shape == (2, 4, 14, 14), out.shape
    assert jnp.allclose(out, ref), "mismatch vs reference"

    # Also exercise the 'same' reflect-padding path (output shape == input).
    out_same = median_pool2d(x, kernel_size=3, stride=1, same=True)
    out_same = jax.block_until_ready(out_same)
    ref_same = _median_pool2d_ref(x, kernel_size=3, stride=1, same=True)
    assert out_same.shape == (2, 4, 16, 16), out_same.shape
    assert jnp.allclose(out_same, ref_same), "mismatch vs reference (same=True)"

    print("KERNEL_OK")
</pallas_src>

<mosaic_0001>
module attributes {stable_mosaic.version = 11 : i64} {
  func.func @_median3x3_kernel(%arg0: i32, %arg1: memref<1x16x128xf32, #tpu.memory_space<vmem>>, %arg2: memref<1x16x128xf32, #tpu.memory_space<vmem>>) attributes {dimension_semantics = [#tpu.dimension_semantics<parallel>], iteration_bounds = array<i64: 1>, scalar_prefetch = 0 : i64, scratch_operands = 0 : i64, tpu.core_type = #tpu.core_type<tc>, window_params = [{transform_indices = @transform_0, window_bounds = array<i64: 1, 16, 128>}, {transform_indices = @transform_1, window_bounds = array<i64: 1, 16, 128>}]} {
    %c0_i32 = arith.constant 0 : i32
    %0 = arith.index_cast %c0_i32 : i32 to index
    %c0 = arith.constant 0 : index
    %c0_0 = arith.constant 0 : index
    %1 = vector.load %arg1[%0, %c0, %c0_0] : memref<1x16x128xf32, #tpu.memory_space<vmem>>, vector<1x16x128xf32>
    %2 = vector.shape_cast %1 : vector<1x16x128xf32> to vector<16x128xf32>
    %c1_i32 = arith.constant 1 : i32
    %3 = tpu.dynamic_rotate %2 by %c1_i32 dim 0 : vector<16x128xf32>, i32 -> vector<16x128xf32>
    %c15_i32 = arith.constant 15 : i32
    %4 = tpu.dynamic_rotate %2 by %c15_i32 dim 0 : vector<16x128xf32>, i32 -> vector<16x128xf32>
    %5 = arith.minimumf %3, %2 : vector<16x128xf32>
    %6 = arith.maximumf %3, %2 : vector<16x128xf32>
    %7 = arith.minimumf %5, %4 : vector<16x128xf32>
    %8 = arith.minimumf %6, %4 : vector<16x128xf32>
    %9 = arith.maximumf %5, %8 : vector<16x128xf32>
    %10 = arith.maximumf %6, %4 : vector<16x128xf32>
    %c1_i32_1 = arith.constant 1 : i32
    %11 = tpu.dynamic_rotate %7 by %c1_i32_1 dim 1 : vector<16x128xf32>, i32 -> vector<16x128xf32>
    %c127_i32 = arith.constant 127 : i32
    %12 = tpu.dynamic_rotate %7 by %c127_i32 dim 1 : vector<16x128xf32>, i32 -> vector<16x128xf32>
    %c1_i32_2 = arith.constant 1 : i32
    %13 = tpu.dynamic_rotate %9 by %c1_i32_2 dim 1 : vector<16x128xf32>, i32 -> vector<16x128xf32>
    %c127_i32_3 = arith.constant 127 : i32
    %14 = tpu.dynamic_rotate %9 by %c127_i32_3 dim 1 : vector<16x128xf32>, i32 -> vector<16x128xf32>
    %c1_i32_4 = arith.constant 1 : i32
    %15 = tpu.dynamic_rotate %10 by %c1_i32_4 dim 1 : vector<16x128xf32>, i32 -> vector<16x128xf32>
    %c127_i32_5 = arith.constant 127 : i32
    %16 = tpu.dynamic_rotate %10 by %c127_i32_5 dim 1 : vector<16x128xf32>, i32 -> vector<16x128xf32>
    %17 = arith.maximumf %11, %7 : vector<16x128xf32>
    %18 = arith.maximumf %17, %12 : vector<16x128xf32>
    %19 = arith.minimumf %13, %9 : vector<16x128xf32>
    %20 = arith.maximumf %13, %9 : vector<16x128xf32>
    %21 = arith.minimumf %20, %14 : vector<16x128xf32>
    %22 = arith.maximumf %19, %21 : vector<16x128xf32>
    %23 = arith.minimumf %15, %10 : vector<16x128xf32>
    %24 = arith.minimumf %23, %16 : vector<16x128xf32>
    %25 = arith.minimumf %18, %22 : vector<16x128xf32>
    %26 = arith.maximumf %18, %22 : vector<16x128xf32>
    %27 = arith.minimumf %26, %24 : vector<16x128xf32>
    %28 = arith.maximumf %25, %27 : vector<16x128xf32>
    %29 = arith.index_cast %c0_i32 : i32 to index
    %c0_6 = arith.constant 0 : index
    %c0_7 = arith.constant 0 : index
    %30 = vector.load %arg2[%29, %c0_6, %c0_7] : memref<1x16x128xf32, #tpu.memory_space<vmem>>, vector<1x16x128xf32>
    %31 = vector.shape_cast %30 : vector<1x16x128xf32> to vector<16x128xf32>
    %32 = vector.shape_cast %28 : vector<16x128xf32> to vector<1x16x128xf32>
    tpu.vector_store %arg2[%29, %c0_6, %c0_7], %32 {strides = array<i32>} : memref<1x16x128xf32, #tpu.memory_space<vmem>>, vector<1x16x128xf32>,
    %c1_i32_8 = arith.constant 1 : i32
    return
  }
  func.func @transform_0(%arg0: i32) -> (i32, i32, i32) {
    %c0_i32 = arith.constant 0 : i32
    %c0_i32_0 = arith.constant 0 : i32
    %c0_i32_1 = arith.constant 0 : i32
    return %arg0, %c0_i32, %c0_i32_0 : i32, i32, i32
  }
  func.func @transform_1(%arg0: i32) -> (i32, i32, i32) {
    %c0_i32 = arith.constant 0 : i32
    %c0_i32_0 = arith.constant 0 : i32
    %c0_i32_1 = arith.constant 0 : i32
    return %arg0, %c0_i32, %c0_i32_0 : i32, i32, i32
  }
}

</mosaic_0001>

<bundles_post_ra>
// kernel: tpu_custom_call.1
= control target key start
LH: loop header
LB: loop body
LE: loop exit
PB: predicated region body
PF: predicated region fallthrough
CT: control target
= control target key end

     0   :  { %6 = vsyncpa [#allocation3], 0  ;;  %s194_s0 = inlined_call_operand.hbm [shape: f32[1,16,128], index: 0, kind: input, shape index: {}]   ;;  %s195_s1 = inlined_call_operand.hbm [shape: f32[1,16,128], index: 1, kind: output, shape index: {}]  }
   0x1   :  { %7 = vsyncpa [#allocation4], 0  ;;  %s166_s6 = smov [#allocation2]  }
   0x2   :  { %s13_s7 = sshll.u32 %s166_s6, 4  ;;  %s14_s7 = int_to_ptr.vmem [resolvable:$true] %s13_s7 }
   0x3   :  { %s130_s8 = scalar_lea.vmem %s14_s7, 256  ;;  %p135_p1 = scmp.lt.s32.totalorder %s14_s7, %s14_s7 }
   0x4   :  { %p131_p0 = scmp.ne.s32.totalorder %s14_s7, %s130_s8  ;;  %p136_p2 = scmp.lt.s32.totalorder %s130_s8, %s130_s8 }
   0x6   :  { %p137_p3 = por %p136_p2, %p135_p1 }
   0x8   :  { %p138_p4 = pnand %p137_p3, %p131_p0 }
   0xa   :  { %141 = shalt.err (!%p138_p4)
}
   0xb   :  { %s167_s9 = smov 128   ;;  %s168_s10 = smov 8  }
   0xc   :  { %19 = dma.hbm_to_vmem [thread:$0]  %s194_s0, 256, %s14_s7, [#allocation3], %s167_s9, %s167_s9, %s168_s10  }
   0xd   :  { %162 = dma.done.wait [#allocation3], 256  }
   0xe   :  { %163 = vsyncadd [#allocation3], 4294967040  ;;  %v27_v0 = vlaneseq  ;;  %v23_v2 = vld [vmem:[#allocation2] sm:$0xff]  ;;  %v24_v3 = vld [vmem:[#allocation2 + $0x8] sm:$0xff]  ;;  %s169_s0 = smov 127   ;;  %s170_s13 = smov 1  }
   0xf   :  { %v25_v4 = vrot.slane %v23_v2, 7  ;;  %v26_v5 = vrot.slane %v24_v3, 7  ;;  %v32_v6 = vrot.slane %v23_v2, 1  ;;  %v33_v7 = vrot.slane %v24_v3, 1  ;;  %s171_s14 = smov [#allocation5]  }
  0x10   :  { %v28_v1 = vshrl.u32 %v27_v0, 7  ;;  %s104_s15 = sshll.u32 %s171_s14, 4  ;;  %s105_s15 = int_to_ptr.vmem [resolvable:$true] %s104_s15 }
  0x11   :  { %s142_s16 = scalar_lea.vmem %s105_s15, 256  ;;  %p147_p6 = scmp.lt.s32.totalorder %s105_s15, %s105_s15 }
  0x12   :  { %vm29_vm0 = vcmp.lt.s32.totalorder %v28_v1, 1  ;;  %vm34_vm1 = vcmp.lt.s32.totalorder %v28_v1, 7  ;;  %p143_p5 = scmp.ne.s32.totalorder %s105_s15, %s142_s16  ;;  %p148_p7 = scmp.lt.s32.totalorder %s142_s16, %s142_s16 }
  0x13   :  { %v31_v8 = vsel %vm29_vm0, %v26_v5, %v25_v4  ;;  %v35_v9 = vsel %vm34_vm1, %v32_v6, %v33_v7  ;;  %v30_v10 = vsel %vm29_vm0, %v25_v4, %v26_v5  ;;  %v36_v14 = vsel %vm34_vm1, %v33_v7, %v32_v6 }
  0x14   :  { %v37_v11 = vmin.f32 %v31_v8, %v23_v2  ;;  %v39_v12 = vmax.f32 %v31_v8, %v23_v2  ;;  %v38_v13 = vmin.f32 %v30_v10, %v24_v3  ;;  %v40_v16 = vmax.f32 %v30_v10, %v24_v3  ;;  %p149_p8 = por %p148_p7, %p147_p6 }
  0x16   :  { %v41_v15 = vmin.f32 %v37_v11, %v35_v9  ;;  %v43_v17 = vmin.f32 %v39_v12, %v35_v9  ;;  %v47_v18 = vmax.f32 %v39_v12, %v35_v9  ;;  %v42_v19 = vmin.f32 %v38_v13, %v36_v14  ;;  %p150_p9 = pnand %p149_p8, %p143_p5 }
  0x17   :  { %v44_v20 = vmin.f32 %v40_v16, %v36_v14  ;;  %v48_v23 = vmax.f32 %v40_v16, %v36_v14 }
  0x18   :  { %53 = vrot.lane.b32.xlu0 %v41_v15, %s169_s0  ;;  %49 = vrot.lane.b32.xlu1 %v41_v15, %s170_s13  ;;  %v45_v21 = vmax.f32 %v37_v11, %v43_v17 }
  0x19   :  { %v46_v22 = vmax.f32 %v38_v13, %v44_v20 }
  0x1c   :  { %65 = vrot.lane.b32.xlu0 %v47_v18, %s170_s13  ;;  %51 = vrot.lane.b32.xlu1 %v42_v19, %s170_s13 }
  0x20   :  { %57 = vrot.lane.b32.xlu0 %v45_v21, %s170_s13  ;;  %55 = vrot.lane.b32.xlu1 %v42_v19, %s169_s0 }
  0x24   :  { %59 = vrot.lane.b32.xlu0 %v46_v22, %s170_s13  ;;  %67 = vrot.lane.b32.xlu1 %v48_v23, %s170_s13 }
  0x28   :  { %61 = vrot.lane.b32.xlu0 %v45_v21, %s169_s0  ;;  %63 = vrot.lane.b32.xlu1 %v46_v22, %s169_s0 }
  0x2c   :  { %69 = vrot.lane.b32.xlu0 %v47_v18, %s169_s0  ;;  %71 = vrot.lane.b32.xlu1 %v48_v23, %s169_s0 }
  0x8a   :  { %v54_v24 = vpop.permute.xlu0 %53  ;;  %v50_v25 = vpop.permute.xlu1 %49 }
  0x8b   :  { %v73_v32 = vmax.f32 %v50_v25, %v41_v15 }
  0x8d   :  { %v75_v42 = vmax.f32 %v73_v32, %v54_v24 }
  0x8e   :  { %v66_v26 = vpop.permute.xlu0 %65  ;;  %v52_v27 = vpop.permute.xlu1 %51 }
  0x8f   :  { %v74_v41 = vmax.f32 %v52_v27, %v42_v19  ;;  %v85_v43 = vmin.f32 %v66_v26, %v47_v18 }
  0x92   :  { %v58_v28 = vpop.permute.xlu0 %57  ;;  %v56_v29 = vpop.permute.xlu1 %55 }
  0x93   :  { %v79_v33 = vmax.f32 %v58_v28, %v45_v21  ;;  %v77_v37 = vmin.f32 %v58_v28, %v45_v21  ;;  %v76_v46 = vmax.f32 %v74_v41, %v56_v29 }
  0x96   :  { %v60_v30 = vpop.permute.xlu0 %59  ;;  %v68_v31 = vpop.permute.xlu1 %67 }
  0x97   :  { %v80_v34 = vmax.f32 %v60_v30, %v46_v22  ;;  %v78_v38 = vmin.f32 %v60_v30, %v46_v22  ;;  %v86_v47 = vmin.f32 %v68_v31, %v48_v23 }
  0x9a   :  { %v62_v35 = vpop.permute.xlu0 %61  ;;  %v64_v36 = vpop.permute.xlu1 %63 }
  0x9b   :  { %v81_v39 = vmin.f32 %v79_v33, %v62_v35  ;;  %v82_v40 = vmin.f32 %v80_v34, %v64_v36 }
  0x9d   :  { %v83_v44 = vmax.f32 %v77_v37, %v81_v39  ;;  %v84_v45 = vmax.f32 %v78_v38, %v82_v40 }
  0x9e   :  { %v70_v48 = vpop.permute.xlu0 %69  ;;  %v72_v49 = vpop.permute.xlu1 %71 }
  0x9f   :  { %v91_v50 = vmax.f32 %v75_v42, %v83_v44  ;;  %v87_v51 = vmin.f32 %v85_v43, %v70_v48  ;;  %v92_v52 = vmax.f32 %v76_v46, %v84_v45  ;;  %v88_v53 = vmin.f32 %v86_v47, %v72_v49 }
  0xa0   :  { %v89_v54 = vmin.f32 %v75_v42, %v83_v44  ;;  %v90_v56 = vmin.f32 %v76_v46, %v84_v45 }
  0xa1   :  { %v93_v55 = vmin.f32 %v91_v50, %v87_v51  ;;  %v94_v57 = vmin.f32 %v92_v52, %v88_v53 }
  0xa3   :  { %v95_v58 = vmax.f32 %v89_v54, %v93_v55  ;;  %v96_v59 = vmax.f32 %v90_v56, %v94_v57 }
  0xa5   :  { %97 = vst [vmem:[#allocation5] sm:$0xff] %v95_v58  ;;  %98 = vst [vmem:[#allocation5 + $0x8] sm:$0xff] %v96_v59 }
  0xa6   :  { %153 = shalt.err (!%p150_p9)
}
  0xa7   :  { %110 = dma.vmem_to_hbm [thread:$0]  %s105_s15, 256, %s195_s1, [#allocation4], %s167_s9, %s167_s9, %s168_s10  }
  0xa8   :  { %164 = dma.done.wait [#allocation4], 256  }
  0xa9   :  { %165 = vsyncadd [#allocation4], 4294967040 }
  0xaa   :  { %114 = vsyncpa [#allocation3], 1 }
  0xab   :  { %115 = vsyncpa [#allocation4], 1 }

</bundles_post_ra>
